<compile_context>
chip_gen: v6e
topology: v6e:2x2x1
jax: 0.10.0
libtpu: 0.0.40
codegen_flags: <defaults>
</compile_context>

<pallas_src>
import jax
import jax.numpy as jnp
from jax import lax
from jax.experimental import pallas as pl
from jax.experimental.pallas import tpu as pltpu

_LANES = 128


def _rows_per_strip(h: int) -> int:
    # Largest divisor of H that is <= 8: keeps the f32 accumulator strip small
    # enough to live in vregs across all 9 taps.
    for r in range(min(h, 8), 0, -1):
        if h % r == 0:
            return r
    return 1


def _dwconv_kernel(x_ref, w_ref, b_ref, o_ref, xp_ref):
    # x_ref : (1, H, W, Ct)       input tile (one batch elem, one channel tile)
    # w_ref : (9, Ct)             3x3 taps, tap-major, channels on lanes
    # b_ref : (1, Ct)             bias
    # o_ref : (1, H, W, Ct)       output tile
    # xp_ref: (H+2, W+2, Ct) f32  scratch: zero-padded copy of the input tile
    _, H, W, Ct = o_ref.shape
    R = _rows_per_strip(H)
    num_strips = H // R

    # ---- Build the zero halo in VMEM (replaces the HBM-side jnp.pad). ----
    zrow = jnp.zeros((1, W + 2, Ct), jnp.float32)
    zcol = jnp.zeros((H, 1, Ct), jnp.float32)
    xp_ref[0:1, :, :] = zrow
    xp_ref[H + 1:H + 2, :, :] = zrow
    xp_ref[1:H + 1, 0:1, :] = zcol
    xp_ref[1:H + 1, W + 1:W + 2, :] = zcol
    # Single f32 cast of the whole tile (instead of one cast per tap).
    xp_ref[1:H + 1, 1:W + 1, :] = x_ref[0].astype(jnp.float32)

    # ---- Parameters: load + cast once per grid step. ----
    taps = w_ref[...].astype(jnp.float32)          # (9, Ct)
    bias = b_ref[...].astype(jnp.float32)          # (1, Ct)

    # ---- Strip-mined 3x3 MAC: the acc strip stays in vregs for all 9 taps
    # and is stored exactly once per strip. ----
    def strip_body(s, carry):
        r0 = s * R
        acc = jnp.broadcast_to(bias, (R, W, Ct))
        for dy in range(3):
            rows = xp_ref[pl.ds(r0 + dy, R), :, :]        # (R, W+2, Ct)
            for dx in range(3):
                acc = acc + rows[:, dx:dx + W, :] * taps[dy * 3 + dx]
        o_ref[0, pl.ds(r0, R), :, :] = acc.astype(o_ref.dtype)
        return carry

    lax.fori_loop(0, num_strips, strip_body, 0, unroll=num_strips <= 4)


def dwconv_pallas(x, weight, bias, size):
    """Depthwise 3x3 conv, stride 1, padding 1 (matches DWConv.forward).

    x:      (B, H*W, C)
    weight: (C, 1, 3, 3)   (PyTorch Conv2d groups=C layout)
    bias:   (C,)
    size:   (H, W)
    returns (B, H*W, C)
    """
    H, W = size
    B, N, C = x.shape
    assert N == H * W

    # Lane-dense channel tiling: pad C up to a multiple of 128 (sliced off at
    # the end).  For realistic dims (multiples of 128) this is a no-op.
    Cp = ((C + _LANES - 1) // _LANES) * _LANES
    Ct = _LANES

    x_nhwc = x.reshape(B, H, W, C)                      # already channel-last
    w = jnp.transpose(weight.reshape(C, 9), (1, 0))     # (9, C), tap-major
    b = bias.reshape(1, C)
    if Cp != C:
        x_nhwc = jnp.pad(x_nhwc, ((0, 0), (0, 0), (0, 0), (0, Cp - C)))
        w = jnp.pad(w, ((0, 0), (0, Cp - C)))
        b = jnp.pad(b, ((0, 0), (0, Cp - C)))

    grid = (B, Cp // Ct)

    out = pl.pallas_call(
        _dwconv_kernel,
        out_shape=jax.ShapeDtypeStruct((B, H, W, Cp), x.dtype),
        grid_spec=pltpu.PrefetchScalarGridSpec(
            num_scalar_prefetch=0,
            grid=grid,
            in_specs=[
                pl.BlockSpec((1, H, W, Ct), lambda i, c: (i, 0, 0, c)),
                pl.BlockSpec((9, Ct), lambda i, c: (0, c)),
                pl.BlockSpec((1, Ct), lambda i, c: (0, c)),
            ],
            out_specs=pl.BlockSpec((1, H, W, Ct), lambda i, c: (i, 0, 0, c)),
            scratch_shapes=[pltpu.VMEM((H + 2, W + 2, Ct), jnp.float32)],
        ),
        compiler_params=pltpu.CompilerParams(
            dimension_semantics=("parallel", "parallel")),
    )(x_nhwc, w, b)

    if Cp != C:
        out = out[..., :C]
    return out.reshape(B, H * W, C)


def dwconv_reference(x, weight, bias, size):
    """Pure-JAX reference (matches torch depthwise Conv2d semantics)."""
    H, W = size
    B, N, C = x.shape
    x_nchw = jnp.transpose(x.reshape(B, H, W, C), (0, 3, 1, 2))  # B C H W
    out = jax.lax.conv_general_dilated(
        x_nchw.astype(jnp.float32),
        weight.astype(jnp.float32),
        window_strides=(1, 1),
        padding=((1, 1), (1, 1)),
        feature_group_count=C,
        dimension_numbers=("NCHW", "OIHW", "NCHW"),
    ) + bias.reshape(1, C, 1, 1)
    out = jnp.transpose(out, (0, 2, 3, 1)).reshape(B, H * W, C)
    return out.astype(x.dtype)


if __name__ == "__main__":
    key = jax.random.PRNGKey(0)
    B, C = 2, 32
    H, W = 8, 8
    size = (H, W)

    k_x, k_w, k_b = jax.random.split(key, 3)
    x = jax.random.normal(k_x, (B, H * W, C), dtype=jnp.float32)
    # Deterministic synthetic parameters matching nn.Conv2d(dim, dim, 3, groups=dim).
    weight = jax.random.normal(k_w, (C, 1, 3, 3), dtype=jnp.float32) * 0.1
    bias = jax.random.normal(k_b, (C,), dtype=jnp.float32) * 0.1

    out = jax.block_until_ready(dwconv_pallas(x, weight, bias, size))

    ref = dwconv_reference(x, weight, bias, size)
    assert out.shape == (B, H * W, C)
    assert jnp.allclose(out, ref, atol=1e-5, rtol=1e-5), "mismatch vs reference"

    print("KERNEL_OK")
</pallas_src>

<mosaic_0001>
module attributes {stable_mosaic.version = 11 : i64} {
  func.func @_dwconv_kernel(%arg0: i32, %arg1: i32, %arg2: memref<1x8x8x128xf32, #tpu.memory_space<vmem>>, %arg3: memref<9x128xf32, #tpu.memory_space<vmem>>, %arg4: memref<1x128xf32, #tpu.memory_space<vmem>>, %arg5: memref<1x8x8x128xf32, #tpu.memory_space<vmem>>, %arg6: memref<10x10x128xf32, #tpu.memory_space<vmem>>) attributes {dimension_semantics = [#tpu.dimension_semantics<parallel>, #tpu.dimension_semantics<parallel>], iteration_bounds = array<i64: 2, 1>, scalar_prefetch = 0 : i64, scratch_operands = 1 : i64, tpu.core_type = #tpu.core_type<tc>, window_params = [{transform_indices = @transform_0, window_bounds = array<i64: 1, 8, 8, 128>}, {transform_indices = @transform_1, window_bounds = array<i64: 9, 128>}, {transform_indices = @transform_2, window_bounds = array<i64: 1, 128>}, {transform_indices = @transform_3, window_bounds = array<i64: 1, 8, 8, 128>}]} {
    %cst = arith.constant 0.000000e+00 : f32
    %0 = vector.broadcast %cst : f32 to vector<1x10x128xf32>
    %cst_0 = arith.constant 0.000000e+00 : f32
    %1 = vector.broadcast %cst_0 : f32 to vector<8x1x128xf32>
    %c0 = arith.constant 0 : index
    %c0_1 = arith.constant 0 : index
    %c0_2 = arith.constant 0 : index
    %2 = vector.load %arg6[%c0, %c0_1, %c0_2] : memref<10x10x128xf32, #tpu.memory_space<vmem>>, vector<1x10x128xf32>
    tpu.vector_store %arg6[%c0, %c0_1, %c0_2], %0 {strides = array<i32>} : memref<10x10x128xf32, #tpu.memory_space<vmem>>, vector<1x10x128xf32>,
    %c9 = arith.constant 9 : index
    %c0_3 = arith.constant 0 : index
    %c0_4 = arith.constant 0 : index
    %3 = vector.load %arg6[%c9, %c0_3, %c0_4] : memref<10x10x128xf32, #tpu.memory_space<vmem>>, vector<1x10x128xf32>
    tpu.vector_store %arg6[%c9, %c0_3, %c0_4], %0 {strides = array<i32>} : memref<10x10x128xf32, #tpu.memory_space<vmem>>, vector<1x10x128xf32>,
    %c1 = arith.constant 1 : index
    %c0_5 = arith.constant 0 : index
    %c0_6 = arith.constant 0 : index
    %4 = vector.load %arg6[%c1, %c0_5, %c0_6] : memref<10x10x128xf32, #tpu.memory_space<vmem>>, vector<8x1x128xf32>
    tpu.vector_store %arg6[%c1, %c0_5, %c0_6], %1 {strides = array<i32>} : memref<10x10x128xf32, #tpu.memory_space<vmem>>, vector<8x1x128xf32>,
    %c1_7 = arith.constant 1 : index
    %c9_8 = arith.constant 9 : index
    %c0_9 = arith.constant 0 : index
    %5 = vector.load %arg6[%c1_7, %c9_8, %c0_9] : memref<10x10x128xf32, #tpu.memory_space<vmem>>, vector<8x1x128xf32>
    tpu.vector_store %arg6[%c1_7, %c9_8, %c0_9], %1 {strides = array<i32>} : memref<10x10x128xf32, #tpu.memory_space<vmem>>, vector<8x1x128xf32>,
    %c0_10 = arith.constant 0 : index
    %c0_11 = arith.constant 0 : index
    %c0_12 = arith.constant 0 : index
    %c0_13 = arith.constant 0 : index
    %6 = vector.load %arg2[%c0_10, %c0_11, %c0_12, %c0_13] : memref<1x8x8x128xf32, #tpu.memory_space<vmem>>, vector<1x8x8x128xf32>
    %7 = vector.shape_cast %6 : vector<1x8x8x128xf32> to vector<8x8x128xf32>
    %c1_14 = arith.constant 1 : index
    %c1_15 = arith.constant 1 : index
    %c0_16 = arith.constant 0 : index
    %8 = vector.load %arg6[%c1_14, %c1_15, %c0_16] : memref<10x10x128xf32, #tpu.memory_space<vmem>>, vector<8x8x128xf32>
    tpu.vector_store %arg6[%c1_14, %c1_15, %c0_16], %7 {strides = array<i32>} : memref<10x10x128xf32, #tpu.memory_space<vmem>>, vector<8x8x128xf32>,
    %c0_17 = arith.constant 0 : index
    %c0_18 = arith.constant 0 : index
    %9 = vector.load %arg3[%c0_17, %c0_18] : memref<9x128xf32, #tpu.memory_space<vmem>>, vector<9x128xf32>
    %c0_19 = arith.constant 0 : index
    %c0_20 = arith.constant 0 : index
    %10 = vector.load %arg4[%c0_19, %c0_20] : memref<1x128xf32, #tpu.memory_space<vmem>>, vector<1x128xf32>
    %c0_i32 = arith.constant 0 : i32
    %c8_i32 = arith.constant 8 : i32
    %11 = arith.muli %c0_i32, %c8_i32 : i32
    %12 = vector.shape_cast %10 : vector<1x128xf32> to vector<1x1x128xf32>
    %13 = vector.broadcast %12 : vector<1x1x128xf32> to vector<8x8x128xf32>
    %c0_i32_21 = arith.constant 0 : i32
    %14 = arith.addi %11, %c0_i32_21 : i32
    %15 = arith.index_cast %14 : i32 to index
    %c0_22 = arith.constant 0 : index
    %c0_23 = arith.constant 0 : index
    %16 = vector.load %arg6[%15, %c0_22, %c0_23] : memref<10x10x128xf32, #tpu.memory_space<vmem>>, vector<8x10x128xf32>
    %17 = vector.extract_strided_slice %16 {offsets = [0, 0, 0], sizes = [8, 8, 128], strides = [1, 1, 1]} : vector<8x10x128xf32> to vector<8x8x128xf32>
    %18 = vector.extract_strided_slice %9 {offsets = [0, 0], sizes = [1, 128], strides = [1, 1]} : vector<9x128xf32> to vector<1x128xf32>
    %19 = vector.shape_cast %18 : vector<1x128xf32> to vector<128xf32>
    %20 = vector.shape_cast %19 : vector<128xf32> to vector<1x1x128xf32>
    %21 = vector.broadcast %20 : vector<1x1x128xf32> to vector<8x8x128xf32>
    %22 = arith.mulf %17, %21 : vector<8x8x128xf32>
    %23 = arith.addf %13, %22 : vector<8x8x128xf32>
    %24 = vector.extract_strided_slice %16 {offsets = [0, 1, 0], sizes = [8, 8, 128], strides = [1, 1, 1]} : vector<8x10x128xf32> to vector<8x8x128xf32>
    %25 = vector.extract_strided_slice %9 {offsets = [1, 0], sizes = [1, 128], strides = [1, 1]} : vector<9x128xf32> to vector<1x128xf32>
    %26 = vector.shape_cast %25 : vector<1x128xf32> to vector<128xf32>
    %27 = vector.shape_cast %26 : vector<128xf32> to vector<1x1x128xf32>
    %28 = vector.broadcast %27 : vector<1x1x128xf32> to vector<8x8x128xf32>
    %29 = arith.mulf %24, %28 : vector<8x8x128xf32>
    %30 = arith.addf %23, %29 : vector<8x8x128xf32>
    %31 = vector.extract_strided_slice %16 {offsets = [0, 2, 0], sizes = [8, 8, 128], strides = [1, 1, 1]} : vector<8x10x128xf32> to vector<8x8x128xf32>
    %32 = vector.extract_strided_slice %9 {offsets = [2, 0], sizes = [1, 128], strides = [1, 1]} : vector<9x128xf32> to vector<1x128xf32>
    %33 = vector.shape_cast %32 : vector<1x128xf32> to vector<128xf32>
    %34 = vector.shape_cast %33 : vector<128xf32> to vector<1x1x128xf32>
    %35 = vector.broadcast %34 : vector<1x1x128xf32> to vector<8x8x128xf32>
    %36 = arith.mulf %31, %35 : vector<8x8x128xf32>
    %37 = arith.addf %30, %36 : vector<8x8x128xf32>
    %c1_i32 = arith.constant 1 : i32
    %38 = arith.addi %11, %c1_i32 : i32
    %39 = arith.index_cast %38 : i32 to index
    %c0_24 = arith.constant 0 : index
    %c0_25 = arith.constant 0 : index
    %40 = vector.load %arg6[%39, %c0_24, %c0_25] : memref<10x10x128xf32, #tpu.memory_space<vmem>>, vector<8x10x128xf32>
    %41 = vector.extract_strided_slice %40 {offsets = [0, 0, 0], sizes = [8, 8, 128], strides = [1, 1, 1]} : vector<8x10x128xf32> to vector<8x8x128xf32>
    %42 = vector.extract_strided_slice %9 {offsets = [3, 0], sizes = [1, 128], strides = [1, 1]} : vector<9x128xf32> to vector<1x128xf32>
    %43 = vector.shape_cast %42 : vector<1x128xf32> to vector<128xf32>
    %44 = vector.shape_cast %43 : vector<128xf32> to vector<1x1x128xf32>
    %45 = vector.broadcast %44 : vector<1x1x128xf32> to vector<8x8x128xf32>
    %46 = arith.mulf %41, %45 : vector<8x8x128xf32>
    %47 = arith.addf %37, %46 : vector<8x8x128xf32>
    %48 = vector.extract_strided_slice %40 {offsets = [0, 1, 0], sizes = [8, 8, 128], strides = [1, 1, 1]} : vector<8x10x128xf32> to vector<8x8x128xf32>
    %49 = vector.extract_strided_slice %9 {offsets = [4, 0], sizes = [1, 128], strides = [1, 1]} : vector<9x128xf32> to vector<1x128xf32>
    %50 = vector.shape_cast %49 : vector<1x128xf32> to vector<128xf32>
    %51 = vector.shape_cast %50 : vector<128xf32> to vector<1x1x128xf32>
    %52 = vector.broadcast %51 : vector<1x1x128xf32> to vector<8x8x128xf32>
    %53 = arith.mulf %48, %52 : vector<8x8x128xf32>
    %54 = arith.addf %47, %53 : vector<8x8x128xf32>
    %55 = vector.extract_strided_slice %40 {offsets = [0, 2, 0], sizes = [8, 8, 128], strides = [1, 1, 1]} : vector<8x10x128xf32> to vector<8x8x128xf32>
    %56 = vector.extract_strided_slice %9 {offsets = [5, 0], sizes = [1, 128], strides = [1, 1]} : vector<9x128xf32> to vector<1x128xf32>
    %57 = vector.shape_cast %56 : vector<1x128xf32> to vector<128xf32>
    %58 = vector.shape_cast %57 : vector<128xf32> to vector<1x1x128xf32>
    %59 = vector.broadcast %58 : vector<1x1x128xf32> to vector<8x8x128xf32>
    %60 = arith.mulf %55, %59 : vector<8x8x128xf32>
    %61 = arith.addf %54, %60 : vector<8x8x128xf32>
    %c2_i32 = arith.constant 2 : i32
    %62 = arith.addi %11, %c2_i32 : i32
    %63 = arith.index_cast %62 : i32 to index
    %c0_26 = arith.constant 0 : index
    %c0_27 = arith.constant 0 : index
    %64 = vector.load %arg6[%63, %c0_26, %c0_27] : memref<10x10x128xf32, #tpu.memory_space<vmem>>, vector<8x10x128xf32>
    %65 = vector.extract_strided_slice %64 {offsets = [0, 0, 0], sizes = [8, 8, 128], strides = [1, 1, 1]} : vector<8x10x128xf32> to vector<8x8x128xf32>
    %66 = vector.extract_strided_slice %9 {offsets = [6, 0], sizes = [1, 128], strides = [1, 1]} : vector<9x128xf32> to vector<1x128xf32>
    %67 = vector.shape_cast %66 : vector<1x128xf32> to vector<128xf32>
    %68 = vector.shape_cast %67 : vector<128xf32> to vector<1x1x128xf32>
    %69 = vector.broadcast %68 : vector<1x1x128xf32> to vector<8x8x128xf32>
    %70 = arith.mulf %65, %69 : vector<8x8x128xf32>
    %71 = arith.addf %61, %70 : vector<8x8x128xf32>
    %72 = vector.extract_strided_slice %64 {offsets = [0, 1, 0], sizes = [8, 8, 128], strides = [1, 1, 1]} : vector<8x10x128xf32> to vector<8x8x128xf32>
    %73 = vector.extract_strided_slice %9 {offsets = [7, 0], sizes = [1, 128], strides = [1, 1]} : vector<9x128xf32> to vector<1x128xf32>
    %74 = vector.shape_cast %73 : vector<1x128xf32> to vector<128xf32>
    %75 = vector.shape_cast %74 : vector<128xf32> to vector<1x1x128xf32>
    %76 = vector.broadcast %75 : vector<1x1x128xf32> to vector<8x8x128xf32>
    %77 = arith.mulf %72, %76 : vector<8x8x128xf32>
    %78 = arith.addf %71, %77 : vector<8x8x128xf32>
    %79 = vector.extract_strided_slice %64 {offsets = [0, 2, 0], sizes = [8, 8, 128], strides = [1, 1, 1]} : vector<8x10x128xf32> to vector<8x8x128xf32>
    %80 = vector.extract_strided_slice %9 {offsets = [8, 0], sizes = [1, 128], strides = [1, 1]} : vector<9x128xf32> to vector<1x128xf32>
    %81 = vector.shape_cast %80 : vector<1x128xf32> to vector<128xf32>
    %82 = vector.shape_cast %81 : vector<128xf32> to vector<1x1x128xf32>
    %83 = vector.broadcast %82 : vector<1x1x128xf32> to vector<8x8x128xf32>
    %84 = arith.mulf %79, %83 : vector<8x8x128xf32>
    %85 = arith.addf %78, %84 : vector<8x8x128xf32>
    %c0_28 = arith.constant 0 : index
    %86 = arith.index_cast %11 : i32 to index
    %c0_29 = arith.constant 0 : index
    %c0_30 = arith.constant 0 : index
    %87 = vector.load %arg5[%c0_28, %86, %c0_29, %c0_30] : memref<1x8x8x128xf32, #tpu.memory_space<vmem>>, vector<1x8x8x128xf32>
    %88 = vector.shape_cast %87 : vector<1x8x8x128xf32> to vector<8x8x128xf32>
    %89 = vector.shape_cast %85 : vector<8x8x128xf32> to vector<1x8x8x128xf32>
    tpu.vector_store %arg5[%c0_28, %86, %c0_29, %c0_30], %89 {strides = array<i32>} : memref<1x8x8x128xf32, #tpu.memory_space<vmem>>, vector<1x8x8x128xf32>,
    %c1_i32_31 = arith.constant 1 : i32
    return
  }
  func.func @transform_0(%arg0: i32, %arg1: i32) -> (i32, i32, i32, i32) {
    %c0_i32 = arith.constant 0 : i32
    %c0_i32_0 = arith.constant 0 : i32
    %c0_i32_1 = arith.constant 0 : i32
    return %arg0, %c0_i32, %c0_i32_0, %arg1 : i32, i32, i32, i32
  }
  func.func @transform_1(%arg0: i32, %arg1: i32) -> (i32, i32) {
    %c0_i32 = arith.constant 0 : i32
    %c0_i32_0 = arith.constant 0 : i32
    return %c0_i32, %arg1 : i32, i32
  }
  func.func @transform_2(%arg0: i32, %arg1: i32) -> (i32, i32) {
    %c0_i32 = arith.constant 0 : i32
    %c0_i32_0 = arith.constant 0 : i32
    return %c0_i32, %arg1 : i32, i32
  }
  func.func @transform_3(%arg0: i32, %arg1: i32) -> (i32, i32, i32, i32) {
    %c0_i32 = arith.constant 0 : i32
    %c0_i32_0 = arith.constant 0 : i32
    %c0_i32_1 = arith.constant 0 : i32
    return %arg0, %c0_i32, %c0_i32_0, %arg1 : i32, i32, i32, i32
  }
}

</mosaic_0001>

<bundles_post_ra>
// kernel: tpu_custom_call.1
= control target key start
LH: loop header
LB: loop body
LE: loop exit
PB: predicated region body
PF: predicated region fallthrough
CT: control target
= control target key end

     0   :  { %8 = vsyncpa [#allocation4], 0  ;;  %s1746_s0 = inlined_call_operand.hbm [shape: f32[2,8,8,128], index: 0, kind: input, shape index: {}]   ;;  %s1747_s1 = inlined_call_operand.hbm [shape: f32[9,128], index: 1, kind: input, shape index: {}]   ;;  %s1748_s2 = inlined_call_operand.vmem [shape: f32[1,128], index: 2, kind: input, shape index: {}]   ;;  %s1749_s3 = inlined_call_operand.hbm [shape: f32[2,8,8,128], index: 3, kind: output, shape index: {}]  }
   0x1   :  { %10 = vsyncpa [#allocation4 + $0x1], 0 }
   0x2   :  { %11 = vsyncpa [#allocation7], 0 }
   0x3   :  { %12 = vsyncpa [#allocation5], 0 }
   0x4   :  { %14 = vsyncpa [#allocation5 + $0x1], 0  ;;  %s1256_s12 = smov 0   ;;  %s1258_s13 = smov 0  }
   0x5   :  { %s1260_s14 = smov 0   ;;  %s1262_s15 = smov 0  }
   0x6   :  { %s1264_s16 = smov 0   ;;  %s1266_s17 = smov 0  }
   0x7 LB: > { %s988_s18 = sadd.s32 4294967295, %s1226_s17   ;;  %s989_s19 = sadd.s32 4294967294, %s1226_s17   ;;  %s1226_s17 = sphi %s1266_s17, %s20_s17   ;;  %s1222_s16 = sphi %s1264_s16, %s1771_s16   ;;  %s1218_s15 = sphi %s1262_s15, %s1770_s15   ;;  %s1214_s14 = sphi %s1260_s14, %s1769_s14   ;;  %s1210_s13 = sphi %s1258_s13, %s1768_s13   ;;  %s1206_s12 = sphi %s1256_s12, %s1767_s12  }
   0x8   : > { %p54_p0 = scmp.ne.s32.totalorder %s1210_s13, %s1206_s12  ;;  %p1290_p1 = scmp.eq.s32.totalorder %s988_s18, 0 }
   0x9   : > { %p1294_p2 = scmp.eq.s32.totalorder %s988_s18, 1  ;;  %p138_p3 = scmp.eq.s32.totalorder %s989_s19, 1 }
   0xa   : > { %p1300_p4 = por %p1290_p1, %p54_p0  ;;  %p990_p5 = scmp.ge.s32.totalorder %s1226_s17, 1 }
   0xb   : > { %p1305_p6 = por %p138_p3, %p54_p0  ;;  %p145_p7 = scmp.lt.s32.totalorder %s1226_s17, 3 }
   0xc   : > { %s1755_s22 = scalar_select %p1300_p4, 1, 0 }
   0xd   : > { %s1756_s23 = scalar_select %p1305_p6, 1, 0 }
   0xe   : > { %p1310_p8 = pnand %p990_p5, %p145_p7  ;;  %s1228_s25 = smov [#allocation6]  }
   0xf   : > { %s159_s26 = sshll.u32 %s1228_s25, 4  ;;  %s32_s28 = sadd.s32 1, %s1222_s16  ;;  %s160_s26 = int_to_ptr.vmem [resolvable:$true] %s159_s26 }
  0x10   : > { %p1018_p9 = pneg %p1310_p8  ;;  %s1099_s29 = scalar_lea.vmem %s160_s26, 256 }
  0x11   : > { %p1100_p13 = scmp.ne.s32.totalorder %s160_s26, %s1099_s29  ;;  %p1107_p5 = scmp.lt.s32.totalorder %s160_s26, %s160_s26 }
  0x12   : > { %p1319_p11 = pnand %p1018_p9, %p1290_p1  ;;  %p1108_p7 = scmp.lt.s32.totalorder %s1099_s29, %s1099_s29 }
  0x14   : > { %p1090_p12 = pneg %p1319_p11  ;;  %p1109_p6 = por %p1108_p7, %p1107_p5 }
  0x16   : > { %p1102_p0 = pnand %p1100_p13, %p1090_p12 }
  0x18   : > { %p1103_p3 = pneg %p1102_p0 }
  0x1a   : > { %p1110_p4 = pnand %p1109_p6, %p1103_p3 }
  0x1c   : > { %1113 = shalt.err (!%p1110_p4)
}
  0x1d   : > { %s1751_s30 = smov 128   ;;  %s1752_s4 = smov 8  }
  0x1e   : > { %1021 = dma.hbm_to_vmem [thread:$0]  (!%p1319_p11), %s1747_s1, 256, %s160_s26, [#allocation7], %s1751_s30, %s1751_s30, %s1752_s4  }
  0x1f   : > { %p34_p4 = scmp.ge.s32.totalorder %s32_s28, 2  ;;  %s41_s7 = sadd.s32 1, %s1214_s14 }
  0x20   : > { %p48_p6 = scmp.ne.s32.totalorder %s1214_s14, %s1210_s13  ;;  %p49_p9 = scmp.eq.s32.totalorder %s1226_s17, 0 }
  0x21   : > { %s1773_s28 = smov (%p34_p4, %s32_s28), 0  ;;  %p1031_p0 = scmp.lt.s32.totalorder %s1226_s17, 2 }
  0x22   : > { %p1340_p12 = por %p49_p9, %p48_p6  ;;  %p1346_p13 = por %p1294_p2, %p48_p6 }
  0x23   : > { %s36_s10 = ssub.s32 %s1222_s16, %s1773_s28  ;;  %s179_s11 = sand.u32 1, %s1214_s14  }
  0x24   : > { %p39_p11 = scmp.eq.s32.totalorder %s36_s10, 0  ;;  %s994_s18 = sshll.u32 %s179_s11, 6 }
  0x25   : > { %s1008_s25 = sshll.u32 %s1222_s16, 10  ;;  %s183_s5 = scalar_lea.vmem [#allocation3], %s994_s18 }
  0x26   : > { %s1355_s19 = scalar_select %p39_p11, %s1214_s14, %s41_s7  }
  0x27   : > { %s190_s29 = scalar_lea.hbm %s1746_s0, %s1008_s25  ;;  %s191_s6 = sshll.u32 %s183_s5, 4  ;;  %s192_s6 = int_to_ptr.vmem [resolvable:$true] %s191_s6 }
  0x28   : > { %p1363_p2 = pnand %p1031_p0, %p1340_p12  ;;  %s180_s30 = scalar_lea.sflag [#allocation4], %s179_s11 }
  0x29   : > { %s1127_s10 = scalar_lea.vmem %s192_s6, 1024  ;;  %s1231_s7 = smov [#allocation3]  }
  0x2a   : > { %p1116_p3 = pneg %p1363_p2  ;;  %p1128_p5 = scmp.ne.s32.totalorder %s192_s6, %s1127_s10 }
  0x2b   : > { %s1132_s4 = sshll.u32 %s1231_s7, 4  ;;  %s1133_s4 = int_to_ptr.vmem [resolvable:$false] %s1132_s4 }
  0x2c   : > { %p1130_p7 = pnand %p1128_p5, %p1116_p3  ;;  %s1134_s25 = scalar_lea.vmem %s1133_s4, 2048 }
  0x2d   : > { %p1135_p6 = scmp.lt.s32.totalorder %s192_s6, %s1133_s4  ;;  %p1136_p9 = scmp.lt.s32.totalorder %s1134_s25, %s1127_s10 }
  0x2e   : > { %p1131_p4 = pneg %p1130_p7 }
  0x2f   : > { %p1137_p11 = por %p1136_p9, %p1135_p6 }
  0x31   : > { %p1138_p10 = pnand %p1137_p11, %p1131_p4 }
  0x33   : > { %1141 = shalt.err (!%p1138_p10)
}
  0x34   : > { %s1762_s8 = smov 8   ;;  %s1763_s18 = smov 128  }
  0x35   : > { %1025 = dma.hbm_to_vmem [thread:$0]  (!%p1363_p2), %s190_s29, 1024, %s192_s6, %s180_s30, %s1763_s18, %s1763_s18, %s1762_s8  }
  0x36   : > { %203 = sbr.rel (%p1310_p8) target bundleno = 183 (0xb7), region = 32  ;;  %s1377_s11 = sand.u32 (!%p1310_p8), 1, %s1210_s13  }
  0x37   : > { %s998_s4 = sshll.u32 (!%p1310_p8), %s1377_s11, 6  ;;  %s206_s26 = scalar_lea.sflag (!%p1310_p8), [#allocation4], %s1377_s11 }
  0x38   : > { %s1383_s27 = scalar_lea.vmem (!%p1310_p8), [#allocation3], %s998_s4  ;;  %p1764_p10 = scmp.ne.s32.totalorder (!%p1310_p8), %s1755_s22, 0 }
  0x3b   : > { %1193 = dma.done.wait (%p1764_p10), %s206_s26, 1024  }
  0x3c   : > { %1195 = vsyncadd (%p1764_p10), %s206_s26, 4294966272 }
  0x3d   : > { %1197 = dma.done.wait (%p1290_p1), [#allocation7], 256  }
  0x3e   : > { %1199 = vsyncadd (%p1290_p1), [#allocation7], 4294967040  ;;  %v305_v0 = vlaneseq  ;;  %v1232_v1 = vmov 0.0   ;;  %v264_v6 = vld [vmem:[%s1383_s27] sm:$0xff]  ;;  %v265_v7 = vld [vmem:[%s1383_s27 + $0x8] sm:$0xff]  ;;  %vm361_vm0 = vcmask 1046528  }
  0x3f   : > { %243 = vst [vmem:[#allocation2 + $0x8] sm:$0x3] %v1232_v1  ;;  %246 = vst [vmem:[#allocation2 + $0x98] sm:$0x3] %v1232_v1  ;;  %v266_v8 = vld [vmem:[%s1383_s27 + $0x10] sm:$0xff]  ;;  %v267_v11 = vld [vmem:[%s1383_s27 + $0x18] sm:$0xff] }
  0x40   : > { %248 = vst [vmem:[#allocation2 + $0x10] sm:$0x1] %v1232_v1  ;;  %249 = vst [vmem:[#allocation2 + $0x20] sm:$0x1] %v1232_v1  ;;  %v1393_v2 = vshrl.u32 %v305_v0, 7  ;;  %v268_v12 = vld [vmem:[%s1383_s27 + $0x20] sm:$0xff] }
  0x41   : > { %250 = vst [vmem:[#allocation2 + $0x30] sm:$0x1] %v1232_v1  ;;  %251 = vst [vmem:[#allocation2 + $0x40] sm:$0x1] %v1232_v1  ;;  %v269_v13 = vld [vmem:[%s1383_s27 + $0x28] sm:$0xff]  ;;  %v270_v14 = vld [vmem:[%s1383_s27 + $0x30] sm:$0xff] }
  0x42   : > { %252 = vst [vmem:[#allocation2 + $0x50] sm:$0x1] %v1232_v1  ;;  %253 = vst [vmem:[#allocation2 + $0x60] sm:$0x1] %v1232_v1  ;;  %v307_v3 = vsub.s32 0, %v1393_v2  ;;  %v327_v4 = vsub.s32 1, %v1393_v2 }
  0x43   : > { %254 = vst [vmem:[#allocation2 + $0x70] sm:$0x1] %v1232_v1  ;;  %255 = vst [vmem:[#allocation2 + $0x80] sm:$0x1] %v1232_v1  ;;  %v404_v5 = vsub.s32 2, %v1393_v2  ;;  %v497_v9 = vsub.s32 3, %v1393_v2 }
  0x44   : > { %256 = vst [vmem:[#allocation2 + $0x19] sm:$0x1] %v1232_v1  ;;  %257 = vst [vmem:[#allocation2 + $0x29] sm:$0x1] %v1232_v1  ;;  %v517_v10 = vsub.s32 4, %v1393_v2  ;;  %v271_v15 = vld [vmem:[%s1383_s27 + $0x38] sm:$0xff] }
  0x45   : > { %258 = vst [vmem:[#allocation2 + $0x39] sm:$0x1] %v1232_v1  ;;  %259 = vst [vmem:[#allocation2 + $0x49] sm:$0x1] %v1232_v1  ;;  %v280_v16 = vld [vmem:[#allocation6] sm:$0xff]  ;;  %v593_v17 = vsub.s32 5, %v1393_v2 }
  0x46   : > { %260 = vst [vmem:[#allocation2 + $0x59] sm:$0x1] %v1232_v1  ;;  %261 = vst [vmem:[#allocation2 + $0x69] sm:$0x1] %v1232_v1  ;;  %v706_v18 = vsub.s32 7, %v1393_v2  ;;  %v1410_v20 = vrot.slane %v280_v16, %v307_v3  ;;  %v1412_v21 = vrot.slane %v280_v16, %v327_v4  ;;  %v1414_v22 = vrot.slane %v280_v16, %v404_v5  ;;  %s1496_s24 = scalar_lea.vmem [#allocation8], %s998_s4 }
  0x47   : > { %262 = vst [vmem:[#allocation2 + $0x79] sm:$0x1] %v1232_v1  ;;  %263 = vst [vmem:[#allocation2 + $0x89] sm:$0x1] %v1232_v1  ;;  %v290_v19 = vld [vmem:[#allocation2 + $0x8] sm:$0x3]  ;;  %v1421_v24 = vrot.slane %v280_v16, %v497_v9  ;;  %v1423_v25 = vrot.slane %v280_v16, %v517_v10  ;;  %v1430_v31 = vrot.slane %v280_v16, %v593_v17 }
  0x48   : > { %272 = vst [vmem:[#allocation2 + $0x11] sm:$0xff] %v264_v6  ;;  %273 = vst [vmem:[#allocation2 + $0x21] sm:$0xff] %v265_v7  ;;  %v1419_v23 = vld [vmem:[%s1748_s2] ss:$0 sm:$0xff]  ;;  %vm438_vm1 = vcmask 1045504   ;;  %v309_v26 = vmul.f32 0.0, %v1410_v20  ;;  %v330_v28 = vmul.f32 %v1412_v21, %v290_v19  ;;  %v407_v30 = vmul.f32 %v1414_v22, %v290_v19 }
  0x49   : > { %274 = vst [vmem:[#allocation2 + $0x31] sm:$0xff] %v266_v8  ;;  %275 = vst [vmem:[#allocation2 + $0x41] sm:$0xff] %v267_v11  ;;  %v329_v27 = vmul.f32 0.0, %v1412_v21  ;;  %v406_v29 = vmul.f32 0.0, %v1414_v22  ;;  %v686_v32 = vsub.s32 6, %v1393_v2  ;;  %v1433_v33 = vrot.slane %v280_v16, %v706_v18  ;;  %s879_s30 = sshll.u32 %s1496_s24, 4  ;;  %s1691_s30 = int_to_ptr.vmem [resolvable:$true] %s879_s30 }
  0x4a   : > { %276 = vst [vmem:[#allocation2 + $0x51] sm:$0xff] %v268_v12  ;;  %277 = vst [vmem:[#allocation2 + $0x61] sm:$0xff] %v269_v13  ;;  %v317_v34 = vadd.f32 %v1419_v23, %v309_v26  ;;  %v363_v36 = vrot.slane %v330_v28, 1  ;;  %v440_v38 = vrot.slane %v407_v30, 2  ;;  %v1442_v47 = vld [vmem:[#allocation6 + $0x8] ss:$0 sm:$0xff] }
  0x4b   : > { %278 = vst [vmem:[#allocation2 + $0x71] sm:$0xff] %v270_v14  ;;  %279 = vst [vmem:[#allocation2 + $0x81] sm:$0xff] %v271_v15  ;;  %v362_v35 = vrot.slane %v329_v27, 1  ;;  %v439_v37 = vrot.slane %v406_v29, 2  ;;  %v1447_v54 = vrot.slane %v280_v16, %v686_v32  ;;  %v1457_v0 = vmul.f32 0.0, %v1433_v33  ;;  %s1009_s29 = sshll.u32 %s1218_s15, 10 }
  0x4c   : > { %s1697_s21 = scalar_lea.hbm %s1749_s3, %s1009_s29  ;;  %s865_s10 = scalar_lea.sflag [#allocation5], %s1377_s11 }
  0x4d   : > { %v364_v42 = vsel %vm361_vm0, %v362_v35, %v363_v36  ;;  %v441_v49 = vsel %vm438_vm1, %v439_v37, %v440_v38  ;;  %s1142_s7 = scalar_lea.vmem %s1691_s30, 1024  ;;  %s1233_s15 = smov [#allocation8]  }
  0x4e   : > { %v394_v48 = vadd.f32 %v364_v42, %v317_v34  ;;  %p1143_p1 = scmp.ne.s32.totalorder %s1691_s30, %s1142_s7  ;;  %s1146_s25 = sshll.u32 %s1233_s15, 4  ;;  %s1147_s25 = int_to_ptr.vmem [resolvable:$false] %s1146_s25 }
  0x4f   : > { %v479_v39 = vld [vmem:[#allocation2 + $0x10] sm:$0xff]  ;;  %v480_v40 = vld [vmem:[#allocation2 + $0x18] sm:$0x3]  ;;  %v1436_v41 = vld [vmem:[#allocation2 + $0x20] sm:$0xff]  ;;  %s1148_s8 = scalar_lea.vmem %s1147_s25, 2048  ;;  %p1149_p0 = scmp.lt.s32.totalorder %s1691_s30, %s1147_s25 }
  0x50   : > { %v499_v43 = vmul.f32 %v1421_v24, %v479_v39  ;;  %v519_v44 = vmul.f32 %v1423_v25, %v479_v39  ;;  %v520_v45 = vmul.f32 %v1423_v25, %v480_v40  ;;  %v669_v46 = vld [vmem:[#allocation2 + $0x28] sm:$0x3]  ;;  %v595_v50 = vmul.f32 %v1430_v31, %v479_v39  ;;  %v292_v60 = vld [vmem:[#allocation2 + $0x18] sm:$0x3]  ;;  %v1475_v34 = vld [vmem:[#allocation2 + $0x30] sm:$0xff]  ;;  %p1144_p8 = pnand %p1143_p1, %p1346_p13  ;;  %p1150_p2 = scmp.lt.s32.totalorder %s1148_s8, %s1142_s7 }
  0x51   : > { %v596_v51 = vmul.f32 %v1430_v31, %v480_v40  ;;  %v708_v55 = vmul.f32 %v1433_v33, %v1436_v41  ;;  %v471_v56 = vadd.f32 %v441_v49, %v394_v48  ;;  %v709_v59 = vmul.f32 %v1433_v33, %v669_v46  ;;  %v482_v13 = vld [vmem:[#allocation2 + $0x28] sm:$0x3] }
  0x52   : > { %v551_v52 = vrot.slane %v519_v44, 1  ;;  %v552_v53 = vrot.slane %v520_v45, 1  ;;  %v627_v57 = vrot.slane %v595_v50, 2  ;;  %v784_v62 = vmul.f32 %v1442_v47, %v1436_v41  ;;  %p1145_p12 = pneg %p1144_p8  ;;  %p1151_p3 = por %p1150_p2, %p1149_p0 }
  0x53   : > { %v628_v58 = vrot.slane %v596_v51, 2  ;;  %v785_v63 = vmul.f32 %v1442_v47, %v669_v46  ;;  %v507_v1 = vadd.f32 %v499_v43, %v471_v56  ;;  %v740_v2 = vrot.slane %v708_v55, 1  ;;  %v294_v55 = vld [vmem:[#allocation2 + $0x28] sm:$0x3] }
  0x54   : > { %v553_v61 = vsel %vm361_vm0, %v551_v52, %v552_v53  ;;  %v741_v3 = vrot.slane %v709_v59, 1  ;;  %v310_v4 = vmul.f32 %v479_v39, %v1410_v20  ;;  %v688_v6 = vmul.f32 %v1447_v54, %v1436_v41  ;;  %p1152_p5 = pnand %p1151_p3, %p1145_p12 }
  0x55   : > { %v629_v5 = vsel %vm438_vm1, %v627_v57, %v628_v58  ;;  %v331_v7 = vmul.f32 %v479_v39, %v1412_v21  ;;  %v332_v8 = vmul.f32 %v1412_v21, %v292_v60  ;;  %v583_v9 = vadd.f32 %v553_v61, %v507_v1 }
  0x56   : > { %v816_v10 = vrot.slane %v784_v62, 2  ;;  %v318_v11 = vadd.f32 %v1419_v23, %v310_v4  ;;  %v408_v12 = vmul.f32 %v479_v39, %v1414_v22  ;;  %v817_v14 = vrot.slane %v785_v63, 2  ;;  %v671_v39 = vld [vmem:[#allocation2 + $0x38] sm:$0x3] }
  0x57   : > { %v365_v15 = vrot.slane %v331_v7, 1  ;;  %v366_v16 = vrot.slane %v332_v8, 1  ;;  %v409_v17 = vmul.f32 %v1414_v22, %v292_v60  ;;  %v659_v18 = vadd.f32 %v629_v5, %v583_v9  ;;  %v484_v5 = vld [vmem:[#allocation2 + $0x38] sm:$0x3] }
  0x58   : > { %v742_v19 = vsel %vm361_vm0, %v740_v2, %v741_v3  ;;  %v442_v26 = vrot.slane %v408_v12, 2  ;;  %v521_v27 = vmul.f32 %v1436_v41, %v1423_v25  ;;  %v522_v30 = vmul.f32 %v1423_v25, %v482_v13 }
  0x59   : > { %v367_v28 = vsel %vm361_vm0, %v365_v15, %v366_v16  ;;  %v443_v29 = vrot.slane %v409_v17, 2  ;;  %v597_v32 = vmul.f32 %v1436_v41, %v1430_v31  ;;  %v696_v35 = vadd.f32 %v688_v6, %v659_v18 }
  0x5a   : > { %v395_v36 = vadd.f32 %v367_v28, %v318_v11  ;;  %v554_v37 = vrot.slane %v521_v27, 1  ;;  %v598_v38 = vmul.f32 %v1430_v31, %v482_v13  ;;  %v500_v42 = vmul.f32 %v1436_v41, %v1421_v24  ;;  %v1514_v27 = vld [vmem:[#allocation2 + $0x40] sm:$0xff]  ;;  %v673_v28 = vld [vmem:[#allocation2 + $0x48] sm:$0x3] }
  0x5b   : > { %v444_v40 = vsel %vm438_vm1, %v442_v26, %v443_v29  ;;  %v555_v43 = vrot.slane %v522_v30, 1  ;;  %v630_v44 = vrot.slane %v597_v32, 2  ;;  %v772_v45 = vadd.f32 %v742_v19, %v696_v35 }
  0x5c   : > { %v472_v46 = vadd.f32 %v444_v40, %v395_v36  ;;  %v631_v48 = vrot.slane %v598_v38, 2  ;;  %v710_v49 = vmul.f32 %v1433_v33, %v1475_v34  ;;  %v818_v50 = vsel %vm438_vm1, %v816_v10, %v817_v14 }
  0x5d   : > { %v711_v51 = vmul.f32 %v1433_v33, %v671_v39  ;;  %v786_v52 = vmul.f32 %v1442_v47, %v1475_v34  ;;  %v787_v53 = vmul.f32 %v1442_v47, %v671_v39  ;;  %v848_v56 = vadd.f32 %v818_v50, %v772_v45  ;;  %v296_v45 = vld [vmem:[#allocation2 + $0x38] sm:$0x3] }
  0x5e   : > { %v508_v57 = vadd.f32 %v500_v42, %v472_v46  ;;  %v556_v58 = vsel %vm361_vm0, %v554_v37, %v555_v43  ;;  %v689_v59 = vmul.f32 %v1447_v54, %v1475_v34  ;;  %v632_v60 = vsel %vm438_vm1, %v630_v44, %v631_v48 }
  0x5f   : > { %v743_v61 = vrot.slane %v710_v49, 1  ;;  %v744_v62 = vrot.slane %v711_v51, 1  ;;  %v311_v63 = vmul.f32 %v1436_v41, %v1410_v20  ;;  %856 = vst [vmem:[%s1496_s24] sm:$0xff] %v848_v56  ;;  %v333_v2 = vmul.f32 %v1436_v41, %v1412_v21 }
  0x60   : > { %v584_v1 = vadd.f32 %v556_v58, %v508_v57  ;;  %v334_v3 = vmul.f32 %v1412_v21, %v294_v55  ;;  %v410_v4 = vmul.f32 %v1436_v41, %v1414_v22  ;;  %v819_v6 = vrot.slane %v786_v52, 2 }
  0x61   : > { %v820_v7 = vrot.slane %v787_v53, 2  ;;  %v319_v8 = vadd.f32 %v1419_v23, %v311_v63  ;;  %v411_v9 = vmul.f32 %v1414_v22, %v294_v55  ;;  %v368_v11 = vrot.slane %v333_v2, 1 }
  0x62   : > { %v660_v10 = vadd.f32 %v632_v60, %v584_v1  ;;  %v369_v12 = vrot.slane %v334_v3, 1  ;;  %v445_v13 = vrot.slane %v410_v4, 2  ;;  %v745_v14 = vsel %vm361_vm0, %v743_v61, %v744_v62  ;;  %v486_v1 = vld [vmem:[#allocation2 + $0x48] sm:$0x3] }
  0x63   : > { %v446_v15 = vrot.slane %v411_v9, 2  ;;  %v523_v16 = vmul.f32 %v1475_v34, %v1423_v25  ;;  %v524_v17 = vmul.f32 %v1423_v25, %v484_v5  ;;  %v599_v19 = vmul.f32 %v1475_v34, %v1430_v31 }
  0x64   : > { %v697_v41 = vadd.f32 %v689_v59, %v660_v10  ;;  %v370_v18 = vsel %vm361_vm0, %v368_v11, %v369_v12  ;;  %v600_v26 = vmul.f32 %v1430_v31, %v484_v5  ;;  %v821_v29 = vsel %vm438_vm1, %v819_v6, %v820_v7 }
  0x65   : > { %v396_v30 = vadd.f32 %v370_v18, %v319_v8  ;;  %v447_v32 = vsel %vm438_vm1, %v445_v13, %v446_v15  ;;  %v557_v35 = vrot.slane %v523_v16, 1  ;;  %v558_v37 = vrot.slane %v524_v17, 1  ;;  %v1547_v13 = vld [vmem:[#allocation2 + $0x50] sm:$0xff] }
  0x66   : > { %v773_v36 = vadd.f32 %v745_v14, %v697_v41  ;;  %v633_v38 = vrot.slane %v599_v19, 2  ;;  %v634_v39 = vrot.slane %v600_v26, 2  ;;  %v501_v42 = vmul.f32 %v1475_v34, %v1421_v24  ;;  %v675_v41 = vld [vmem:[#allocation2 + $0x58] sm:$0x3] }
  0x67   : > { %v473_v40 = vadd.f32 %v447_v32, %v396_v30  ;;  %v712_v43 = vmul.f32 %v1433_v33, %v1514_v27  ;;  %v713_v44 = vmul.f32 %v1433_v33, %v673_v28  ;;  %v690_v48 = vmul.f32 %v1447_v54, %v1514_v27 }
  0x68   : > { %v849_v46 = vadd.f32 %v821_v29, %v773_v36  ;;  %v788_v49 = vmul.f32 %v1442_v47, %v1514_v27  ;;  %v789_v50 = vmul.f32 %v1442_v47, %v673_v28  ;;  %v312_v55 = vmul.f32 %v1475_v34, %v1410_v20 }
  0x69   : > { %v509_v51 = vadd.f32 %v501_v42, %v473_v40  ;;  %v746_v52 = vrot.slane %v712_v43, 1  ;;  %v747_v53 = vrot.slane %v713_v44, 1  ;;  %v559_v56 = vsel %vm361_vm0, %v557_v35, %v558_v37  ;;  %v298_v40 = vld [vmem:[#allocation2 + $0x48] sm:$0x3] }
  0x6a   : > { %857 = vst [vmem:[%s1496_s24 + $0x8] sm:$0xff] %v849_v46  ;;  %v635_v57 = vsel %vm438_vm1, %v633_v38, %v634_v39  ;;  %v335_v58 = vmul.f32 %v1475_v34, %v1412_v21  ;;  %v336_v59 = vmul.f32 %v1412_v21, %v296_v45  ;;  %v822_v61 = vrot.slane %v788_v49, 2 }
  0x6b   : > { %v585_v60 = vadd.f32 %v559_v56, %v509_v51  ;;  %v320_v62 = vadd.f32 %v1419_v23, %v312_v55  ;;  %v412_v63 = vmul.f32 %v1475_v34, %v1414_v22  ;;  %v823_v2 = vrot.slane %v789_v50, 2  ;;  %v488_v56 = vld [vmem:[#allocation2 + $0x58] sm:$0x3] }
  0x6c   : > { %v371_v3 = vrot.slane %v335_v58, 1  ;;  %v372_v4 = vrot.slane %v336_v59, 1  ;;  %v413_v5 = vmul.f32 %v1414_v22, %v296_v45  ;;  %v748_v7 = vsel %vm361_vm0, %v746_v52, %v747_v53 }
  0x6d   : > { %v661_v6 = vadd.f32 %v635_v57, %v585_v60  ;;  %v448_v8 = vrot.slane %v412_v63, 2  ;;  %v525_v9 = vmul.f32 %v1514_v27, %v1423_v25  ;;  %v526_v12 = vmul.f32 %v1423_v25, %v486_v1 }
  0x6e   : > { %v373_v10 = vsel %vm361_vm0, %v371_v3, %v372_v4  ;;  %v449_v11 = vrot.slane %v413_v5, 2  ;;  %v601_v34 = vmul.f32 %v1514_v27, %v1430_v31  ;;  %v602_v17 = vmul.f32 %v1430_v31, %v486_v1 }
  0x6f   : > { %v698_v14 = vadd.f32 %v690_v48, %v661_v6  ;;  %v397_v15 = vadd.f32 %v373_v10, %v320_v62  ;;  %v560_v16 = vrot.slane %v525_v9, 1  ;;  %v502_v19 = vmul.f32 %v1514_v27, %v1421_v24  ;;  %v1582_v9 = vld [vmem:[#allocation2 + $0x60] sm:$0xff]  ;;  %v677_v10 = vld [vmem:[#allocation2 + $0x68] sm:$0x3] }
  0x70   : > { %v450_v18 = vsel %vm438_vm1, %v448_v8, %v449_v11  ;;  %v561_v26 = vrot.slane %v526_v12, 1  ;;  %v636_v28 = vrot.slane %v601_v34, 2  ;;  %v637_v32 = vrot.slane %v602_v17, 2 }
  0x71   : > { %v774_v29 = vadd.f32 %v748_v7, %v698_v14  ;;  %v474_v30 = vadd.f32 %v450_v18, %v397_v15  ;;  %v714_v35 = vmul.f32 %v1433_v33, %v1547_v13  ;;  %v824_v36 = vsel %vm438_vm1, %v822_v61, %v823_v2 }
  0x72   : > { %v715_v37 = vmul.f32 %v1433_v33, %v675_v41  ;;  %v790_v38 = vmul.f32 %v1442_v47, %v1547_v13  ;;  %v791_v39 = vmul.f32 %v1442_v47, %v675_v41  ;;  %v562_v44 = vsel %vm361_vm0, %v560_v16, %v561_v26 }
  0x73   : > { %v850_v42 = vadd.f32 %v824_v36, %v774_v29  ;;  %v510_v43 = vadd.f32 %v502_v19, %v474_v30  ;;  %v691_v45 = vmul.f32 %v1447_v54, %v1547_v13  ;;  %v638_v46 = vsel %vm438_vm1, %v636_v28, %v637_v32  ;;  %v300_v29 = vld [vmem:[#allocation2 + $0x58] sm:$0x3] }
  0x74   : > { %v749_v48 = vrot.slane %v714_v35, 1  ;;  %v750_v49 = vrot.slane %v715_v37, 1  ;;  %v313_v50 = vmul.f32 %v1514_v27, %v1410_v20  ;;  %v337_v52 = vmul.f32 %v1514_v27, %v1412_v21 }
  0x75   : > { %858 = vst [vmem:[%s1496_s24 + $0x10] sm:$0xff] %v850_v42  ;;  %v586_v51 = vadd.f32 %v562_v44, %v510_v43  ;;  %v338_v53 = vmul.f32 %v1412_v21, %v298_v40  ;;  %v414_v55 = vmul.f32 %v1514_v27, %v1414_v22  ;;  %v825_v57 = vrot.slane %v790_v38, 2 }
  0x76   : > { %v826_v58 = vrot.slane %v791_v39, 2  ;;  %v321_v59 = vadd.f32 %v1419_v23, %v313_v50  ;;  %v415_v60 = vmul.f32 %v1414_v22, %v298_v40  ;;  %v374_v62 = vrot.slane %v337_v52, 1 }
  0x77   : > { %v662_v61 = vadd.f32 %v638_v46, %v586_v51  ;;  %v375_v63 = vrot.slane %v338_v53, 1  ;;  %v451_v1 = vrot.slane %v414_v55, 2  ;;  %v751_v2 = vsel %vm361_vm0, %v749_v48, %v750_v49  ;;  %v490_v51 = vld [vmem:[#allocation2 + $0x68] sm:$0x3] }
  0x78   : > { %v452_v3 = vrot.slane %v415_v60, 2  ;;  %v527_v4 = vmul.f32 %v1547_v13, %v1423_v25  ;;  %v528_v5 = vmul.f32 %v1423_v25, %v488_v56  ;;  %v603_v7 = vmul.f32 %v1547_v13, %v1430_v31 }
  0x79   : > { %v699_v27 = vadd.f32 %v691_v45, %v662_v61  ;;  %v376_v6 = vsel %vm361_vm0, %v374_v62, %v375_v63  ;;  %v604_v8 = vmul.f32 %v1430_v31, %v488_v56  ;;  %v827_v11 = vsel %vm438_vm1, %v825_v57, %v826_v58 }
  0x7a   : > { %v398_v12 = vadd.f32 %v376_v6, %v321_v59  ;;  %v453_v34 = vsel %vm438_vm1, %v451_v1, %v452_v3  ;;  %v563_v14 = vrot.slane %v527_v4, 1  ;;  %v564_v16 = vrot.slane %v528_v5, 1  ;;  %v1615_v1 = vld [vmem:[#allocation2 + $0x70] sm:$0xff] }
  0x7b   : > { %v775_v15 = vadd.f32 %v751_v2, %v699_v27  ;;  %v639_v17 = vrot.slane %v603_v7, 2  ;;  %v640_v41 = vrot.slane %v604_v8, 2  ;;  %v503_v19 = vmul.f32 %v1547_v13, %v1421_v24  ;;  %v679_v27 = vld [vmem:[#allocation2 + $0x78] sm:$0x3] }
  0x7c   : > { %v475_v18 = vadd.f32 %v453_v34, %v398_v12  ;;  %v716_v26 = vmul.f32 %v1433_v33, %v1582_v9  ;;  %v717_v28 = vmul.f32 %v1433_v33, %v677_v10  ;;  %v692_v32 = vmul.f32 %v1447_v54, %v1582_v9 }
  0x7d   : > { %v851_v30 = vadd.f32 %v827_v11, %v775_v15  ;;  %v792_v35 = vmul.f32 %v1442_v47, %v1582_v9  ;;  %v793_v36 = vmul.f32 %v1442_v47, %v677_v10  ;;  %v314_v40 = vmul.f32 %v1547_v13, %v1410_v20 }
  0x7e   : > { %v511_v37 = vadd.f32 %v503_v19, %v475_v18  ;;  %v752_v38 = vrot.slane %v716_v26, 1  ;;  %v753_v39 = vrot.slane %v717_v28, 1  ;;  %v565_v42 = vsel %vm361_vm0, %v563_v14, %v564_v16  ;;  %v302_v18 = vld [vmem:[#allocation2 + $0x68] sm:$0x3] }
  0x7f   : > { %859 = vst [vmem:[%s1496_s24 + $0x18] sm:$0xff] %v851_v30  ;;  %v641_v43 = vsel %vm438_vm1, %v639_v17, %v640_v41  ;;  %v339_v44 = vmul.f32 %v1547_v13, %v1412_v21  ;;  %v340_v45 = vmul.f32 %v1412_v21, %v300_v29  ;;  %v828_v48 = vrot.slane %v792_v35, 2 }
  0x80   : > { %v587_v46 = vadd.f32 %v565_v42, %v511_v37  ;;  %v322_v49 = vadd.f32 %v1419_v23, %v314_v40  ;;  %v416_v50 = vmul.f32 %v1547_v13, %v1414_v22  ;;  %v829_v52 = vrot.slane %v793_v36, 2  ;;  %v492_v42 = vld [vmem:[#allocation2 + $0x78] sm:$0x3] }
  0x81   : > { %v377_v53 = vrot.slane %v339_v44, 1  ;;  %v378_v55 = vrot.slane %v340_v45, 1  ;;  %v417_v56 = vmul.f32 %v1414_v22, %v300_v29  ;;  %v754_v58 = vsel %vm361_vm0, %v752_v38, %v753_v39 }
  0x82   : > { %v663_v57 = vadd.f32 %v641_v43, %v587_v46  ;;  %v454_v59 = vrot.slane %v416_v50, 2  ;;  %v529_v60 = vmul.f32 %v1582_v9, %v1423_v25  ;;  %v530_v63 = vmul.f32 %v1423_v25, %v490_v51 }
  0x83   : > { %v379_v61 = vsel %vm361_vm0, %v377_v53, %v378_v55  ;;  %v455_v62 = vrot.slane %v417_v56, 2  ;;  %v605_v13 = vmul.f32 %v1582_v9, %v1430_v31  ;;  %v606_v5 = vmul.f32 %v1430_v31, %v490_v51 }
  0x84   : > { %v700_v2 = vadd.f32 %v692_v32, %v663_v57  ;;  %v399_v3 = vadd.f32 %v379_v61, %v322_v49  ;;  %v566_v4 = vrot.slane %v529_v60, 1  ;;  %v504_v7 = vmul.f32 %v1582_v9, %v1421_v24  ;;  %v680_v60 = vld [vmem:[#allocation2 + $0x80] sm:$0xff]  ;;  %v681_v61 = vld [vmem:[#allocation2 + $0x88] sm:$0x3] }
  0x85   : > { %v456_v6 = vsel %vm438_vm1, %v454_v59, %v455_v62  ;;  %v567_v8 = vrot.slane %v530_v63, 1  ;;  %v642_v10 = vrot.slane %v605_v13, 2  ;;  %v643_v34 = vrot.slane %v606_v5, 2 }
  0x86   : > { %v776_v11 = vadd.f32 %v754_v58, %v700_v2  ;;  %v476_v12 = vadd.f32 %v456_v6, %v399_v3  ;;  %v718_v14 = vmul.f32 %v1433_v33, %v1615_v1  ;;  %v830_v15 = vsel %vm438_vm1, %v828_v48, %v829_v52 }
  0x87   : > { %v719_v16 = vmul.f32 %v1433_v33, %v679_v27  ;;  %v794_v17 = vmul.f32 %v1442_v47, %v1615_v1  ;;  %v795_v41 = vmul.f32 %v1442_v47, %v679_v27  ;;  %v568_v28 = vsel %vm361_vm0, %v566_v4, %v567_v8 }
  0x88   : > { %v852_v19 = vadd.f32 %v830_v15, %v776_v11  ;;  %v512_v26 = vadd.f32 %v504_v7, %v476_v12  ;;  %v693_v29 = vmul.f32 %v1447_v54, %v1615_v1  ;;  %v644_v30 = vsel %vm438_vm1, %v642_v10, %v643_v34  ;;  %v304_v11 = vld [vmem:[#allocation2 + $0x78] sm:$0x3] }
  0x89   : > { %v755_v32 = vrot.slane %v718_v14, 1  ;;  %v756_v35 = vrot.slane %v719_v16, 1  ;;  %v315_v36 = vmul.f32 %v1582_v9, %v1410_v20  ;;  %v341_v38 = vmul.f32 %v1582_v9, %v1412_v21 }
  0x8a   : > { %860 = vst [vmem:[%s1496_s24 + $0x20] sm:$0xff] %v852_v19  ;;  %v588_v37 = vadd.f32 %v568_v28, %v512_v26  ;;  %v342_v39 = vmul.f32 %v1412_v21, %v302_v18  ;;  %v418_v40 = vmul.f32 %v1582_v9, %v1414_v22  ;;  %v831_v43 = vrot.slane %v794_v17, 2 }
  0x8b   : > { %v832_v44 = vrot.slane %v795_v41, 2  ;;  %v323_v45 = vadd.f32 %v1419_v23, %v315_v36  ;;  %v419_v46 = vmul.f32 %v1414_v22, %v302_v18  ;;  %v380_v49 = vrot.slane %v341_v38, 1 }
  0x8c   : > { %v664_v48 = vadd.f32 %v644_v30, %v588_v37  ;;  %v381_v50 = vrot.slane %v342_v39, 1  ;;  %v457_v51 = vrot.slane %v418_v40, 2  ;;  %v757_v52 = vsel %vm361_vm0, %v755_v32, %v756_v35  ;;  %v494_v37 = vld [vmem:[#allocation2 + $0x88] sm:$0x3] }
  0x8d   : > { %v458_v53 = vrot.slane %v419_v46, 2  ;;  %v531_v55 = vmul.f32 %v1615_v1, %v1423_v25  ;;  %v532_v56 = vmul.f32 %v1423_v25, %v492_v42  ;;  %v607_v58 = vmul.f32 %v1615_v1, %v1430_v31 }
  0x8e   : > { %v701_v9 = vadd.f32 %v693_v29, %v664_v48  ;;  %v382_v57 = vsel %vm361_vm0, %v380_v49, %v381_v50  ;;  %v608_v59 = vmul.f32 %v1430_v31, %v492_v42  ;;  %v833_v62 = vsel %vm438_vm1, %v831_v43, %v832_v44 }
  0x8f   : > { %v400_v63 = vadd.f32 %v382_v57, %v323_v45  ;;  %v569_v13 = vrot.slane %v531_v55, 1  ;;  %v570_v2 = vrot.slane %v532_v56, 1  ;;  %v459_v4 = vsel %vm438_vm1, %v457_v51, %v458_v53 }
  0x90   : > { %v777_v3 = vadd.f32 %v757_v52, %v701_v9  ;;  %v645_v5 = vrot.slane %v607_v58, 2  ;;  %v646_v27 = vrot.slane %v608_v59, 2  ;;  %v505_v7 = vmul.f32 %v1615_v1, %v1421_v24 }
  0x91   : > { %v477_v6 = vadd.f32 %v459_v4, %v400_v63  ;;  %v720_v8 = vmul.f32 %v1433_v33, %v680_v60  ;;  %v721_v10 = vmul.f32 %v1433_v33, %v681_v61  ;;  %v694_v34 = vmul.f32 %v1447_v54, %v680_v60 }
  0x92   : > { %v853_v12 = vadd.f32 %v833_v62, %v777_v3  ;;  %v796_v14 = vmul.f32 %v1442_v47, %v680_v60  ;;  %v797_v15 = vmul.f32 %v1442_v47, %v681_v61  ;;  %v571_v17 = vsel %vm361_vm0, %v569_v13, %v570_v2 }
  0x93   : > { %v513_v16 = vadd.f32 %v505_v7, %v477_v6  ;;  %v647_v41 = vsel %vm438_vm1, %v645_v5, %v646_v27  ;;  %v316_v18 = vmul.f32 %v1615_v1, %v1410_v20  ;;  %v758_v19 = vrot.slane %v720_v8, 1 }
  0x94   : > { %861 = vst [vmem:[%s1496_s24 + $0x28] sm:$0xff] %v853_v12  ;;  %v759_v26 = vrot.slane %v721_v10, 1  ;;  %v343_v28 = vmul.f32 %v1615_v1, %v1412_v21  ;;  %v344_v29 = vmul.f32 %v1412_v21, %v304_v11  ;;  %v834_v32 = vrot.slane %v796_v14, 2  ;;  %v683_v21 = vld [vmem:[#allocation2 + $0x98] sm:$0x3] }
  0x95   : > { %v589_v30 = vadd.f32 %v571_v17, %v513_v16  ;;  %v324_v35 = vadd.f32 %v1419_v23, %v316_v18  ;;  %v420_v36 = vmul.f32 %v1615_v1, %v1414_v22  ;;  %v835_v38 = vrot.slane %v797_v15, 2 }
  0x96   : > { %v383_v39 = vrot.slane %v343_v28, 1  ;;  %v384_v40 = vrot.slane %v344_v29, 1  ;;  %v421_v20 = vmul.f32 %v1414_v22, %v304_v11  ;;  %v506_v44 = vmul.f32 %v680_v60, %v1421_v24 }
  0x97   : > { %v665_v42 = vadd.f32 %v647_v41, %v589_v30  ;;  %v460_v43 = vrot.slane %v420_v36, 2  ;;  %v533_v45 = vmul.f32 %v680_v60, %v1423_v25  ;;  %v534_v23 = vmul.f32 %v1423_v25, %v494_v37 }
  0x98   : > { %v385_v46 = vsel %vm361_vm0, %v383_v39, %v384_v40  ;;  %v461_v48 = vrot.slane %v421_v20, 2  ;;  %v609_v1 = vmul.f32 %v680_v60, %v1430_v31  ;;  %v610_v52 = vmul.f32 %v1430_v31, %v494_v37 }
  0x99   : > { %v702_v49 = vadd.f32 %v694_v34, %v665_v42  ;;  %v401_v50 = vadd.f32 %v385_v46, %v324_v35  ;;  %v572_v51 = vrot.slane %v533_v45, 1  ;;  %v760_v22 = vsel %vm361_vm0, %v758_v19, %v759_v26 }
  0x9a   : > { %v462_v24 = vsel %vm438_vm1, %v460_v43, %v461_v48  ;;  %v573_v53 = vrot.slane %v534_v23, 1  ;;  %v723_v55 = vmul.f32 %v1433_v33, %v683_v21  ;;  %v836_v57 = vsel %vm438_vm1, %v834_v32, %v835_v38 }
  0x9b   : > { %v778_v56 = vadd.f32 %v760_v22, %v702_v49  ;;  %v478_v9 = vadd.f32 %v462_v24, %v401_v50  ;;  %v648_v58 = vrot.slane %v609_v1, 2  ;;  %v649_v59 = vrot.slane %v610_v52, 2 }
  0x9c   : > { %v574_v25 = vsel %vm361_vm0, %v572_v51, %v573_v53  ;;  %v761_v61 = vrot.slane %v1457_v0, 1  ;;  %v762_v62 = vrot.slane %v723_v55, 1  ;;  %v798_v63 = vmul.f32 0.0, %v1442_v47 }
  0x9d   : > { %v854_v60 = vadd.f32 %v836_v57, %v778_v56  ;;  %v514_v31 = vadd.f32 %v506_v44, %v478_v9  ;;  %v799_v13 = vmul.f32 %v1442_v47, %v683_v21  ;;  %v695_v2 = vmul.f32 0.0, %v1447_v54 }
  0x9e   : > { %v650_v3 = vsel %vm438_vm1, %v648_v58, %v649_v59  ;;  %v763_v5 = vsel %vm361_vm0, %v761_v61, %v762_v62  ;;  %v837_v27 = vrot.slane %v798_v63, 2 }
  0x9f   : > { %862 = vst [vmem:[%s1496_s24 + $0x30] sm:$0xff] %v854_v60  ;;  %v590_v33 = vadd.f32 %v574_v25, %v514_v31  ;;  %v838_v6 = vrot.slane %v799_v13, 2 }
  0xa1   : > { %v666_v4 = vadd.f32 %v650_v3, %v590_v33  ;;  %v839_v47 = vsel %vm438_vm1, %v837_v27, %v838_v6 }
  0xa3   : > { %v703_v0 = vadd.f32 %v695_v2, %v666_v4 }
  0xa5   : > { %v779_v7 = vadd.f32 %v763_v5, %v703_v0 }
  0xa7   : > { %v855_v54 = vadd.f32 %v839_v47, %v779_v7 }
  0xa9   : > { %863 = vst [vmem:[%s1496_s24 + $0x38] sm:$0xff] %v855_v54 }
  0xaa   : > { %1155 = shalt.err (!%p1152_p5)
}
  0xab   : > { %s1156_s18 = scalar_lea.hbm %s1697_s21, 1024  ;;  %s1160_s27 = scalar_lea.hbm %s1749_s3, 2048 }
  0xac   : > { %p1157_p7 = scmp.ne.s32.totalorder %s1697_s21, %s1156_s18  ;;  %p1161_p9 = scmp.lt.s32.totalorder %s1697_s21, %s1749_s3 }
  0xad   : > { %p1162_p11 = scmp.lt.s32.totalorder %s1160_s27, %s1156_s18 }
  0xae   : > { %p1158_p4 = pnand %p1157_p7, %p1346_p13 }
  0xaf   : > { %p1163_p10 = por %p1162_p11, %p1161_p9 }
  0xb0   : > { %p1159_p6 = pneg %p1158_p4 }
  0xb2   : > { %p1164_p1 = pnand %p1163_p10, %p1159_p6 }
  0xb4   : > { %1167 = shalt.err (!%p1164_p1)
}
  0xb5   : > { %s1234_s24 = smov 128   ;;  %s1235_s29 = smov 8  }
  0xb6   : > { %1016 = dma.vmem_to_hbm [thread:$0]  (%p1346_p13), %s1691_s30, 1024, %s1697_s21, %s865_s10, %s1234_s24, %s1234_s24, %s1235_s29  }
  0xb7 PF: > { %s894_s5 = sand.u32 1, %s1206_s12   ;;  %p1765_p8 = scmp.ne.s32.totalorder %s1756_s23, 0 }
  0xb8   : > { %p1766_p12 = scmp.ge.s32.totalorder %s1226_s17, 2  ;;  %s895_s6 = scalar_lea.sflag [#allocation5], %s894_s5 }
  0xba   : > { %p1027_p0 = pnand %p1766_p12, %p1765_p8 }
  0xbc   : > { %p1028_p2 = pneg %p1027_p0 }
  0xbe   : > { %1201 = dma.done.wait (%p1028_p2), %s895_s6, 1024  }
  0xbf   : > { %1203 = vsyncadd (%p1028_p2), %s895_s6, 4294966272  ;;  %s20_s17 = sadd.s32 1, %s1226_s17   ;;  %s1767_s12 = smov %s1210_s13 }
  0xc0   : > { %p17_p3 = scmp.ge.s32.totalorder %s20_s17, 4   ;;  %s1768_s13 = smov %s1214_s14 }
  0xc1   : > { %s1769_s14 = smov %s1355_s19  ;;  %s1770_s15 = smov %s1222_s16 }
  0xc2   : > { %s1771_s16 = smov %s1773_s28  ;;  %19 = sbr.rel (!%p17_p3) target bundleno = 7 (0x7), region = 88 }
  0xc7   :  { %900 = vsyncpa [#allocation4], 1 }
  0xc8   :  { %902 = vsyncpa [#allocation4 + $0x1], 1 }
  0xc9   :  { %903 = vsyncpa [#allocation7], 1 }
  0xca   :  { %904 = vsyncpa [#allocation5], 1 }
  0xcb   :  { %906 = vsyncpa [#allocation5 + $0x1], 1 }

</bundles_post_ra>
